<compile_context>
chip_gen: v5e
topology: v5e:2x2
jax: 0.10.0
libtpu: 0.0.40
codegen_flags: <defaults>
</compile_context>

<pallas_src>
import jax
import jax.numpy as jnp
from jax.experimental import pallas as pl
from jax.experimental.pallas import tpu as pltpu


def _round_up(n, m):
    return ((n + m - 1) // m) * m


def obs_embedder_kernel(x_ref, w_ref, p_ref, o_ref):
    # Hoist the three (1, E) param rows once per grid step.
    bias = p_ref[0:1, :]
    gamma = p_ref[1:2, :]
    beta = p_ref[2:3, :]

    # Linear: (TB, obs_dim) @ (obs_dim, E) -> (TB, E) on the MXU, f32 accumulate
    # regardless of input dtype (f32 or bf16).
    h = jnp.dot(x_ref[...], w_ref[...], preferred_element_type=jnp.float32)
    h = jnp.maximum(h + bias, 0.0)                      # bias + ReLU (VPU)

    # One-pass LayerNorm moments off the same h vregs; the two cross-lane
    # reductions (XLU) are independent of each other.
    inv_e = 1.0 / h.shape[-1]
    s1 = jnp.sum(h, axis=-1, keepdims=True)
    s2 = jnp.sum(h * h, axis=-1, keepdims=True)
    mean = s1 * inv_e
    var = jnp.maximum(s2 * inv_e - mean * mean, 0.0)    # guard tiny cancellation
    normed = (h - mean) * jax.lax.rsqrt(var + 1e-5)     # rsqrt -> EUP

    o_ref[...] = (normed * gamma + beta).astype(o_ref.dtype)


def observation_embedder(x, w, b, gamma, beta, *, tb=None, compute_dtype=None):
    """x: (B, obs_dim); w: (obs_dim, E); b, gamma, beta: (E,). Returns (B, E).

    compute_dtype=jnp.bfloat16 casts x/W to bf16 (halves HBM traffic); the
    matmul accumulate and all LayerNorm math stay f32; output keeps x's dtype.
    """
    B, obs_dim = x.shape
    E = w.shape[1]
    out_dtype = x.dtype

    if compute_dtype is not None:
        x = x.astype(compute_dtype)
        w = w.astype(compute_dtype)
    in_dtype = x.dtype
    in_size = jnp.dtype(in_dtype).itemsize
    out_size = jnp.dtype(out_dtype).itemsize
    sublane = 16 if in_size == 2 else 8

    # ---- batch tile size ------------------------------------------------
    if tb is None:
        # Target ~8 MiB of double-buffered (x + out) per grid step so the
        # ~0.35 us per-step overhead is amortised (tiles this size hit ~85% of
        # HBM roofline).  Widths are lane-padded to 128.
        row_bytes = (in_size * _round_up(obs_dim, 128)
                     + out_size * _round_up(E, 128))
        tb = (8 << 20) // max(2 * row_bytes, 1)
        tb = max(256, min(tb, 4096))
        # Keep >= ~8 grid steps on large batches so both v7x TCs get work.
        if B >= 2048:
            tb = min(tb, _round_up(pl.cdiv(B, 8), sublane))
    tb = _round_up(max(int(tb), sublane), sublane)
    TB = min(tb, _round_up(B, sublane))
    grid_steps = pl.cdiv(B, TB)          # ragged last block handled by Pallas

    # Fold the three (E,) vectors into one (3, E) f32 array -> one small DMA.
    params = jnp.stack(
        [b.astype(jnp.float32), gamma.astype(jnp.float32), beta.astype(jnp.float32)],
        axis=0,
    )

    # ---- VMEM budget (generation-aware) ----------------------------------
    x_tile_bytes = TB * _round_up(obs_dim, 128) * in_size       # lane-padded
    out_tile_bytes = TB * _round_up(E, 128) * out_size
    w_bytes = _round_up(obs_dim, sublane) * _round_up(E, 128) * in_size  # Buffered(1)
    p_bytes = 8 * _round_up(E, 128) * 4                          # padded, Buffered(1)
    vmem_bytes = 2 * x_tile_bytes + 2 * out_tile_bytes + w_bytes + p_bytes
    try:
        vmem_cap = int(pltpu.get_tpu_info().vmem_capacity_bytes)
    except Exception:
        vmem_cap = 64 << 20                                      # v7x floor
    vmem_limit = max(min(vmem_bytes + (4 << 20), vmem_cap - (4 << 20)), 16 << 20)

    cost = pl.CostEstimate(
        flops=2 * B * obs_dim * E,
        transcendentals=B,                                        # rsqrt per row
        bytes_accessed=(B * obs_dim * in_size + obs_dim * E * in_size
                        + 3 * E * 4 + B * E * out_size),
    )

    out = pl.pallas_call(
        obs_embedder_kernel,
        out_shape=jax.ShapeDtypeStruct((B, E), out_dtype),
        grid_spec=pltpu.PrefetchScalarGridSpec(
            num_scalar_prefetch=0,
            grid=(grid_steps,),
            in_specs=[
                pl.BlockSpec((TB, obs_dim), lambda i: (i, 0)),            # batch-tiled x
                pl.BlockSpec((obs_dim, E), lambda i: (0, 0),
                             pipeline_mode=pl.Buffered(1)),               # resident W
                pl.BlockSpec((3, E), lambda i: (0, 0),
                             pipeline_mode=pl.Buffered(1)),               # resident b/gamma/beta
            ],
            out_specs=pl.BlockSpec((TB, E), lambda i: (i, 0)),
        ),
        compiler_params=pltpu.CompilerParams(
            # batch tiles are independent -> shard across TCs where available
            dimension_semantics=("parallel",),
            vmem_limit_bytes=int(vmem_limit),
        ),
        cost_estimate=cost,
    )(x, w.astype(in_dtype), params)

    return out


def reference(x, w, b, gamma, beta):
    h = jnp.maximum(x @ w + b, 0.0)
    mean = jnp.mean(h, axis=-1, keepdims=True)
    var = jnp.mean((h - mean) ** 2, axis=-1, keepdims=True)
    return ((h - mean) * jax.lax.rsqrt(var + 1e-5)) * gamma + beta


if __name__ == "__main__":
    # Small shapes; batch deliberately not a multiple of the tile so the
    # ragged last block and a multi-step grid are exercised (tb=8 -> grid=(3,)).
    batch = 20
    obs_dim = 32
    embedding_dim = 128

    key = jax.random.PRNGKey(0)
    kx, kw, kb = jax.random.split(key, 3)

    x = jax.random.normal(kx, (batch, obs_dim), dtype=jnp.float32)

    # Deterministic parameter init (synthetic, matching nn.Linear shapes,
    # stored transposed: (obs_dim, embedding_dim)).
    bound = 1.0 / jnp.sqrt(obs_dim)
    w = jax.random.uniform(kw, (obs_dim, embedding_dim),
                           minval=-bound, maxval=bound, dtype=jnp.float32)
    b = jax.random.uniform(kb, (embedding_dim,),
                           minval=-bound, maxval=bound, dtype=jnp.float32)
    gamma = jnp.ones((embedding_dim,), dtype=jnp.float32)   # LayerNorm weight
    beta = jnp.zeros((embedding_dim,), dtype=jnp.float32)   # LayerNorm bias

    ref = reference(x, w, b, gamma, beta)

    # f32 path, explicit small tile -> multi-step grid with ragged last block.
    out = observation_embedder(x, w, b, gamma, beta, tb=8)
    jax.block_until_ready(out)
    assert out.shape == (batch, embedding_dim)
    assert jnp.allclose(out, ref, atol=1e-5, rtol=1e-5), "mismatch vs reference (tb=8)"

    # Auto-tiled f32 path (tile chosen from feature dims; single ragged block here).
    out_auto = observation_embedder(x, w, b, gamma, beta)
    jax.block_until_ready(out_auto)
    assert jnp.allclose(out_auto, ref, atol=1e-5, rtol=1e-5), "mismatch vs reference (auto)"

    # bf16 x/W path: halves HBM traffic on real batches; f32 accumulate keeps
    # LayerNorm math exact, so only the matmul inputs lose precision.
    out_bf16 = observation_embedder(x, w, b, gamma, beta, compute_dtype=jnp.bfloat16)
    jax.block_until_ready(out_bf16)
    assert jnp.allclose(out_bf16, ref, atol=1e-1, rtol=1e-1), "mismatch vs reference (bf16)"

    print("KERNEL_OK")
</pallas_src>

<mosaic_0001>
module attributes {stable_mosaic.version = 11 : i64} {
  func.func @obs_embedder_kernel(%arg0: i32, %arg1: memref<8x32xf32, #tpu.memory_space<vmem>>, %arg2: memref<32x128xf32, #tpu.memory_space<vmem>>, %arg3: memref<3x128xf32, #tpu.memory_space<vmem>>, %arg4: memref<8x128xf32, #tpu.memory_space<vmem>>) attributes {dimension_semantics = [#tpu.dimension_semantics<parallel>], iteration_bounds = array<i64: 3>, scalar_prefetch = 0 : i64, scratch_operands = 0 : i64, tpu.core_type = #tpu.core_type<tc>, window_params = [{transform_indices = @transform_0, window_bounds = array<i64: 8, 32>}, {pipeline_mode = #tpu.pipeline_mode<synchronous>, transform_indices = @transform_1, window_bounds = array<i64: 32, 128>}, {pipeline_mode = #tpu.pipeline_mode<synchronous>, transform_indices = @transform_2, window_bounds = array<i64: 3, 128>}, {transform_indices = @transform_3, window_bounds = array<i64: 8, 128>}]} {
    %c0 = arith.constant 0 : index
    %c0_0 = arith.constant 0 : index
    %0 = vector.load %arg3[%c0, %c0_0] : memref<3x128xf32, #tpu.memory_space<vmem>>, vector<1x128xf32>
    %c1 = arith.constant 1 : index
    %c0_1 = arith.constant 0 : index
    %1 = vector.load %arg3[%c1, %c0_1] : memref<3x128xf32, #tpu.memory_space<vmem>>, vector<1x128xf32>
    %c2 = arith.constant 2 : index
    %c0_2 = arith.constant 0 : index
    %2 = vector.load %arg3[%c2, %c0_2] : memref<3x128xf32, #tpu.memory_space<vmem>>, vector<1x128xf32>
    %c0_3 = arith.constant 0 : index
    %c0_4 = arith.constant 0 : index
    %3 = vector.load %arg1[%c0_3, %c0_4] : memref<8x32xf32, #tpu.memory_space<vmem>>, vector<8x32xf32>
    %c0_5 = arith.constant 0 : index
    %c0_6 = arith.constant 0 : index
    %4 = vector.load %arg2[%c0_5, %c0_6] : memref<32x128xf32, #tpu.memory_space<vmem>>, vector<32x128xf32>
    %cst = arith.constant dense<0.000000e+00> : vector<8x128xf32>
    %5 = tpu.matmul %3, %4, %cst {dimension_numbers = #tpu.dot_dimension_numbers<[1], [0], [0], [1], [0, 0, 1, 1], [], []>} : vector<8x32xf32>, vector<32x128xf32>, vector<8x128xf32> -> vector<8x128xf32>
    %6 = vector.broadcast %0 : vector<1x128xf32> to vector<8x128xf32>
    %7 = arith.addf %5, %6 : vector<8x128xf32>
    %cst_7 = arith.constant 0.000000e+00 : f32
    %8 = vector.broadcast %cst_7 : f32 to vector<8x128xf32>
    %9 = arith.maximumf %7, %8 : vector<8x128xf32>
    %cst_8 = arith.constant dense<0.000000e+00> : vector<8xf32>
    %10 = vector.multi_reduction <add>, %9, %cst_8 [1] : vector<8x128xf32> to vector<8xf32>
    %11 = vector.shape_cast %10 : vector<8xf32> to vector<8x1xf32>
    %12 = arith.mulf %9, %9 : vector<8x128xf32>
    %cst_9 = arith.constant dense<0.000000e+00> : vector<8xf32>
    %13 = vector.multi_reduction <add>, %12, %cst_9 [1] : vector<8x128xf32> to vector<8xf32>
    %14 = vector.shape_cast %13 : vector<8xf32> to vector<8x1xf32>
    %cst_10 = arith.constant 7.812500e-03 : f32
    %15 = vector.broadcast %cst_10 : f32 to vector<8x1xf32>
    %16 = arith.mulf %11, %15 : vector<8x1xf32>
    %cst_11 = arith.constant 7.812500e-03 : f32
    %17 = vector.broadcast %cst_11 : f32 to vector<8x1xf32>
    %18 = arith.mulf %14, %17 : vector<8x1xf32>
    %19 = arith.mulf %16, %16 : vector<8x1xf32>
    %20 = arith.subf %18, %19 : vector<8x1xf32>
    %cst_12 = arith.constant 0.000000e+00 : f32
    %21 = vector.broadcast %cst_12 : f32 to vector<8x1xf32>
    %22 = arith.maximumf %20, %21 : vector<8x1xf32>
    %23 = vector.broadcast %16 : vector<8x1xf32> to vector<8x128xf32>
    %24 = arith.subf %9, %23 : vector<8x128xf32>
    %cst_13 = arith.constant 9.99999974E-6 : f32
    %25 = vector.broadcast %cst_13 : f32 to vector<8x1xf32>
    %26 = arith.addf %22, %25 : vector<8x1xf32>
    %27 = math.rsqrt %26 : vector<8x1xf32>
    %28 = vector.broadcast %27 : vector<8x1xf32> to vector<8x128xf32>
    %29 = arith.mulf %24, %28 : vector<8x128xf32>
    %30 = vector.broadcast %1 : vector<1x128xf32> to vector<8x128xf32>
    %31 = arith.mulf %29, %30 : vector<8x128xf32>
    %32 = vector.broadcast %2 : vector<1x128xf32> to vector<8x128xf32>
    %33 = arith.addf %31, %32 : vector<8x128xf32>
    %c0_14 = arith.constant 0 : index
    %c0_15 = arith.constant 0 : index
    %34 = vector.load %arg4[%c0_14, %c0_15] : memref<8x128xf32, #tpu.memory_space<vmem>>, vector<8x128xf32>
    tpu.vector_store %arg4[%c0_14, %c0_15], %33 {strides = array<i32>} : memref<8x128xf32, #tpu.memory_space<vmem>>, vector<8x128xf32>,
    return
  }
  func.func @transform_0(%arg0: i32) -> (i32, i32) {
    %c0_i32 = arith.constant 0 : i32
    %c0_i32_0 = arith.constant 0 : i32
    return %arg0, %c0_i32 : i32, i32
  }
  func.func @transform_1(%arg0: i32) -> (i32, i32) {
    %c0_i32 = arith.constant 0 : i32
    %c0_i32_0 = arith.constant 0 : i32
    %c0_i32_1 = arith.constant 0 : i32
    return %c0_i32, %c0_i32_0 : i32, i32
  }
  func.func @transform_2(%arg0: i32) -> (i32, i32) {
    %c0_i32 = arith.constant 0 : i32
    %c0_i32_0 = arith.constant 0 : i32
    %c0_i32_1 = arith.constant 0 : i32
    return %c0_i32, %c0_i32_0 : i32, i32
  }
  func.func @transform_3(%arg0: i32) -> (i32, i32) {
    %c0_i32 = arith.constant 0 : i32
    %c0_i32_0 = arith.constant 0 : i32
    return %arg0, %c0_i32 : i32, i32
  }
}

</mosaic_0001>

<bundles_post_ra>
// kernel: tpu_custom_call.1
= control target key start
LH: loop header
LB: loop body
LE: loop exit
PB: predicated region body
PF: predicated region fallthrough
CT: control target
= control target key end

     0   :  { %8 = vsyncpa [#allocation3], 0  ;;  %s810_s0 = inlined_call_operand.hbm [shape: f32[20,32], index: 0, kind: input, shape index: {}]   ;;  %s811_s1 = inlined_call_operand.hbm [shape: f32[32,128], index: 1, kind: input, shape index: {}]   ;;  %s812_s2 = inlined_call_operand.hbm [shape: f32[3,128], index: 2, kind: input, shape index: {}]   ;;  %s813_s3 = inlined_call_operand.hbm [shape: f32[20,128], index: 3, kind: output, shape index: {}]  }
   0x1   :  { %10 = vsyncpa [#allocation3 + $0x1], 0 }
   0x2   :  { %11 = vsyncpa [#allocation6], 0 }
   0x3   :  { %12 = vsyncpa [#allocation4], 0 }
   0x4   :  { %14 = vsyncpa [#allocation4 + $0x1], 0  ;;  %s663_s12 = smov 0   ;;  %s665_s13 = smov 0  }
   0x5   :  { %s667_s14 = smov 0   ;;  %s669_s15 = smov 0  }
   0x6 LB: > { %s130_s18 = sshll.u32 %s811_s1, 4  ;;  %s687_s19 = sadd.s32 4294967295, %s637_s15   ;;  %s637_s15 = sphi %s669_s15, %s823_s15   ;;  %s633_s14 = sphi %s667_s14, %s822_s14   ;;  %s629_s13 = sphi %s665_s13, %s821_s13   ;;  %s625_s12 = sphi %s663_s12, %s820_s12   ;;  %s131_s18 = int_to_ptr.hbm [resolvable:$true] %s130_s18 }
   0x7   : > { %p387_p0 = scmp.ge.s32.totalorder %s637_s15, 1  ;;  %p41_p1 = scmp.eq.s32.totalorder %s687_s19, 0 }
   0x8   : > { %p119_p2 = scmp.lt.s32.totalorder %s637_s15, 4  ;;  %s639_s21 = smov [#allocation5]  }
   0x9   : > { %s132_s22 = sshll.u32 %s639_s21, 4  ;;  %s145_s25 = sshll.u32 %s812_s2, 4  ;;  %s133_s22 = int_to_ptr.vmem [resolvable:$true] %s132_s22  ;;  %s146_s25 = int_to_ptr.hbm [resolvable:$true] %s145_s25 }
   0xa   : > { %p692_p3 = pnand %p387_p0, %p119_p2  ;;  %s640_s26 = smov [#allocation7]  }
   0xb   : > { %s147_s27 = sshll.u32 %s640_s26, 4  ;;  %s641_s28 = smov 128   ;;  %s148_s27 = int_to_ptr.vmem [resolvable:$true] %s147_s27 }
   0xc   : > { %p415_p4 = pneg %p692_p3  ;;  %s642_s29 = smov 8  }
   0xd   : > { %s386_s30 = sadd.s32 4294967294, %s637_s15   ;;  %s705_s4 = sadd.s32 1, %s637_s15  }
   0xe   : > { %p416_p5 = pnand %p415_p4, %p41_p1  ;;  %s24_s5 = ssub.s32 %s637_s15, %s705_s4 }
   0xf   : > { %s27_s6 = sadd.s32 1, %s633_s14  ;;  %p25_p6 = scmp.eq.s32.totalorder %s24_s5, 0 }
  0x10   : > { %418 = dma.hbm_to_vmem [thread:$0]  (!%p416_p5), %s131_s18, 512, %s133_s22, [#allocation6], %s641_s28, %s641_s28, %s642_s29  }
  0x11   : > { %421 = dma.hbm_to_vmem [thread:$0]  (!%p416_p5), %s146_s25, 64, %s148_s27, [#allocation6]  }
  0x12   : > { %p34_p7 = scmp.ne.s32.totalorder %s633_s14, %s629_s13  ;;  %p35_p8 = scmp.eq.s32.totalorder %s637_s15, 0 }
  0x13   : > { %p40_p9 = scmp.ne.s32.totalorder %s629_s13, %s625_s12  ;;  %p106_p12 = scmp.eq.s32.totalorder %s687_s19, 2 }
  0x14   : > { %s716_s7 = scalar_select %p25_p6, %s633_s14, %s27_s6  }
  0x15   : > { %p718_p10 = por %p35_p8, %p34_p7  ;;  %p724_p11 = por %p41_p1, %p40_p9 }
  0x16   : > { %p112_p13 = scmp.eq.s32.totalorder %s386_s30, 2  ;;  %p432_p0 = scmp.lt.s32.totalorder %s637_s15, 3 }
  0x17   : > { %s158_s10 = sand.u32 1, %s633_s14   ;;  %p731_p2 = por %p106_p12, %p34_p7 }
  0x18   : > { %p735_p4 = por %p112_p13, %p40_p9  ;;  %s391_s17 = sshll.u32 %s158_s10, 3 }
  0x19   : > { %s392_s18 = sshll.u32 %s637_s15, 3  ;;  %s162_s24 = scalar_lea.vmem [#allocation2], %s391_s17 }
  0x1a   : > { %s166_s23 = scalar_lea.hbm %s810_s0, %s392_s18  ;;  %s170_s25 = sshll.u32 %s162_s24, 4  ;;  %s171_s25 = int_to_ptr.vmem [resolvable:$true] %s170_s25 }
  0x1b   : > { %s168_s26 = sshll.u32 %s166_s23, 4  ;;  %p745_p5 = pnand %p432_p0, %p718_p10  ;;  %s169_s26 = int_to_ptr.hbm [resolvable:$true] %s168_s26 }
  0x1c   : > { %s159_s28 = scalar_lea.sflag [#allocation3], %s158_s10  ;;  %s537_s29 = sshra.s32 %s169_s26, 4  ;;  %s538_s29 = int_to_ptr.hbm [resolvable:$true] %s537_s29 }
  0x1d   : > { %s539_s30 = scalar_lea.hbm %s538_s29, 8  ;;  %p541_p7 = pneg %p745_p5 }
  0x1e   : > { %p540_p6 = scmp.ne.s32.totalorder %s538_s29, %s539_s30  ;;  %s544_s17 = scalar_lea.hbm %s810_s0, 24 }
  0x1f   : > { %p545_p10 = scmp.lt.s32.totalorder %s538_s29, %s810_s0  ;;  %p546_p12 = scmp.lt.s32.totalorder %s544_s17, %s539_s30 }
  0x20   : > { %p542_p8 = pnand %p541_p7, %p540_p6 }
  0x21   : > { %p547_p13 = por %p546_p12, %p545_p10 }
  0x22   : > { %p543_p9 = pneg %p542_p8 }
  0x24   : > { %p548_p0 = pnand %p547_p13, %p543_p9 }
  0x26   : > { %551 = shalt.err (!%p548_p0)
}
  0x27   : > { %425 = dma.hbm_to_vmem [thread:$0]  (!%p745_p5), %s169_s26, 128, %s171_s25, %s159_s28  }
  0x28   : > { %179 = sbr.rel (%p692_p3) target bundleno = 345 (0x159), region = 32  ;;  %s762_s10 = sand.u32 (!%p692_p3), 1, %s629_s13  }
  0x29   : > { %s394_s21 = sshll.u32 (!%p692_p3), %s762_s10, 3  ;;  %s182_s22 = scalar_lea.sflag (!%p692_p3), [#allocation3], %s762_s10 }
  0x2a   : > { %s185_s23 = scalar_lea.vmem (!%p692_p3), [#allocation2], %s394_s21 }
  0x2d   : > { %612 = dma.done.wait (%p724_p11), %s182_s22, 128  }
  0x2e   : > { %614 = vsyncadd (%p724_p11), %s182_s22, 4294967168 }
  0x2f   : > { %616 = dma.done.wait (%p41_p1), [#allocation6], 576  }
  0x30   : > { %618 = vsyncadd (%p41_p1), [#allocation6], 4294966720  ;;  %v226_v0 = vld [vmem:[#allocation5 + $0x18] sm:$0xff]  ;;  %v225_v1 = vld [vmem:[#allocation5 + $0x10] sm:$0xff]  ;;  %vm228_vm0 = vcmask 261120   ;;  %s400_s20 = sshll.u32 %s687_s19, 3 }
  0x31   : > { %244 = vmatpush.msra.mxu0 %v226_v0  ;;  %v224_v2 = vld [vmem:[#allocation5 + $0x8] sm:$0xff]  ;;  %v223_v3 = vld [vmem:[#allocation5] sm:$0xff]  ;;  %v222_v4 = vld [vmem:[%s185_s23] sm:$0xff]  ;;  %s292_s25 = scalar_lea.hbm %s813_s3, %s400_s20  ;;  %s218_s26 = scalar_lea.vmem [#allocation8], %s394_s21 }
  0x32   : > { %v472_v5 = vld [vmem:[#allocation7] ss:$0 sm:$0xff]  ;;  %v473_v25 = vld [vmem:[#allocation7 + $0x1] ss:$0 sm:$0xff]  ;;  %v474_v28 = vld [vmem:[#allocation7 + $0x2] ss:$0 sm:$0xff] }
  0x33   : > { %245 = vmatpush.msra.mxu0 %v225_v1  ;;  %s294_s27 = sshll.u32 %s218_s26, 4  ;;  %s296_s28 = sshll.u32 %s292_s25, 4  ;;  %s295_s27 = int_to_ptr.vmem [resolvable:$true] %s294_s27  ;;  %s297_s28 = int_to_ptr.hbm [resolvable:$true] %s296_s28 }
  0x34   : > { %s282_s19 = scalar_lea.sflag [#allocation4], %s762_s10  ;;  %s581_s29 = sshra.s32 %s297_s28, 4  ;;  %s582_s29 = int_to_ptr.hbm [resolvable:$true] %s581_s29 }
  0x35   : > { %246 = vmatpush.msra.mxu0 %v224_v2  ;;  %s583_s30 = scalar_lea.hbm %s582_s29, 8  ;;  %s587_s17 = scalar_lea.hbm %s813_s3, 24 }
  0x36   : > { %p584_p1 = scmp.ne.s32.totalorder %s582_s29, %s583_s30  ;;  %p588_p5 = scmp.lt.s32.totalorder %s582_s29, %s813_s3 }
  0x37   : > { %247 = vmatpush.msra.mxu0 %v223_v3  ;;  %p589_p6 = scmp.lt.s32.totalorder %s587_s17, %s583_s30 }
  0x38   : > { %398 = vmatmul.msk.f32.vlgmr.msra.gmra.mxu0 %vm228_vm0, %v222_v4  ;;  %p585_p3 = pnand %p584_p1, %p731_p2 }
  0x39   : > { %p590_p7 = por %p589_p6, %p588_p5 }
  0x3a   : > { %p586_p11 = pneg %p585_p3 }
  0x3c   : > { %p591_p8 = pnand %p590_p7, %p586_p11 }
  0xb5   : > { %v249_v6 = vpop.f32.mrf.mxu0 }
  0xb6   : > { %v250_v7 = vadd.f32 %v472_v5, %v249_v6 }
  0xb8   : > { %v252_v8 = vmax.f32 %v250_v7, 0.0 }
  0xba   : > { %253 = vadd.xlane.f32.xlu0 %v252_v8  ;;  %v255_v9 = vmul.f32 %v252_v8, %v252_v8 }
  0xc2   : > { %256 = vadd.xlane.f32.xlu0 %v255_v9 }
 0x12d   : > { %v254_v10 = vpop.xlane.xlu0 %253 }
 0x12e   : > { %v258_v11 = vmul.f32 0.0078125, %v254_v10 }
 0x130   : > { %v260_v13 = vmul.f32 %v258_v11, %v258_v11  ;;  %v263_v24 = vsub.f32 %v252_v8, %v258_v11 }
 0x135   : > { %v257_v12 = vpop.xlane.xlu0 %256 }
 0x136   : > { %v259_v14 = vmul.f32 0.0078125, %v257_v12 }
 0x138   : > { %v261_v15 = vsub.f32 %v259_v14, %v260_v13 }
 0x13a   : > { %v262_v16 = vmax.f32 %v261_v15, 0.0 }
 0x13c   : > { %v264_v17 = vadd.f32 1e-05, %v262_v16 }
 0x13e   : > { %475 = vrsqrt.f32 %v264_v17  ;;  %vm271_vm2 = vweird.f32 %v264_v17 }
 0x144   : > { %v476_v18 = vpop.eup %475 }
 0x145   : > { %v266_v19 = vmul.f32 %v476_v18, %v264_v17  ;;  %vm272_vm1 = vweird.f32 %v476_v18 }
 0x146   : > { %vm273_vm3 = vmor %vm271_vm2, %vm272_vm1 }
 0x147   : > { %v267_v20 = vmul.f32 %v476_v18, %v266_v19 }
 0x149   : > { %v268_v21 = vmul.f32 0.5, %v267_v20 }
 0x14b   : > { %v269_v22 = vsub.f32 1.5, %v268_v21 }
 0x14d   : > { %v270_v23 = vmul.f32 %v476_v18, %v269_v22 }
 0x14f   : > { %v274_v26 = vsel %vm273_vm3, %v476_v18, %v270_v23 }
 0x150   : > { %v275_v27 = vmul.f32 %v274_v26, %v263_v24 }
 0x152   : > { %v277_v29 = vmul.f32 %v473_v25, %v275_v27 }
 0x154   : > { %v279_v30 = vadd.f32 %v474_v28, %v277_v29 }
 0x156   : > { %280 = vst [vmem:[%s218_s26] sm:$0xff] %v279_v30 }
 0x157   : > { %594 = shalt.err (!%p591_p8)
}
 0x158   : > { %413 = dma.vmem_to_hbm [thread:$0]  (%p731_p2), %s295_s27, 128, %s297_s28, %s282_s19  }
 0x159 PF: > { %p435_p9 = scmp.ge.s32.totalorder %s637_s15, 2  ;;  %s308_s10 = sand.u32 1, %s625_s12  }
 0x15a   : > { %s309_s21 = scalar_lea.sflag [#allocation4], %s308_s10 }
 0x15b   : > { %p427_p10 = pnand %p435_p9, %p735_p4 }
 0x15d   : > { %p428_p12 = pneg %p427_p10 }
 0x15f   : > { %620 = dma.done.wait (%p428_p12), %s309_s21, 128  }
 0x160   : > { %622 = vsyncadd (%p428_p12), %s309_s21, 4294967168  ;;  %p17_p13 = scmp.ge.s32.totalorder %s705_s4, 5   ;;  %s820_s12 = smov %s629_s13 }
 0x161   : > { %s821_s13 = smov %s633_s14  ;;  %s822_s14 = smov %s716_s7 }
 0x162   : > { %s823_s15 = smov %s705_s4  ;;  %19 = sbr.rel (!%p17_p13) target bundleno = 6 (0x6), region = 85 }
 0x167   :  { %315 = vsyncpa [#allocation3], 1 }
 0x168   :  { %317 = vsyncpa [#allocation3 + $0x1], 1 }
 0x169   :  { %318 = vsyncpa [#allocation6], 1 }
 0x16a   :  { %319 = vsyncpa [#allocation4], 1 }
 0x16b   :  { %321 = vsyncpa [#allocation4 + $0x1], 1 }

</bundles_post_ra>
